<compile_context>
chip_gen: v7x
topology: tpu7x:2x2x1
jax: 0.10.0
libtpu: 0.0.40
codegen_flags: <defaults>
</compile_context>

<pallas_src>
import jax
import jax.numpy as jnp
from jax.experimental import pallas as pl
from jax.experimental.pallas import tpu as pltpu


_MAX_INFLIGHT = 4                 # DMA descriptors in flight (rolling semaphore window)
_TARGET_CHUNK_BYTES = 32 << 20    # ~32 MiB per descriptor: few, large, roofline copies
_MAX_CHUNKS = 16                  # bound on statically unrolled descriptors


def _make_hbm_copy_kernel(n_rows, rows_per_chunk):
    """Kernel copying an HBM ref to an identically shaped HBM ref.

    Slices along axis 0 into contiguous chunks and keeps up to _MAX_INFLIGHT
    DMAs in flight.  No VMEM staging, no vector loads/stores at all.
    """
    n_chunks = -(-n_rows // rows_per_chunk)  # cdiv, static

    def kernel(x_hbm, y_hbm, sems):
        copies = []
        for c in range(n_chunks):          # static unroll (n_chunks <= _MAX_CHUNKS)
            start = c * rows_per_chunk
            size = min(rows_per_chunk, n_rows - start)
            cp = pltpu.make_async_copy(
                x_hbm.at[pl.ds(start, size)],
                y_hbm.at[pl.ds(start, size)],
                sems.at[c % _MAX_INFLIGHT],
            )
            if c >= _MAX_INFLIGHT:
                # Free this semaphore slot before reusing it.
                copies[c - _MAX_INFLIGHT].wait()
            cp.start()
            copies.append(cp)
        # Drain the trailing window.
        for cp in copies[max(0, n_chunks - _MAX_INFLIGHT):]:
            cp.wait()

    return kernel


def _pallas_copy(x, *, target_chunk_bytes=_TARGET_CHUNK_BYTES):
    """Identity copy of `x` (any shape / dtype) via chunked HBM->HBM DMA."""
    squeeze = False
    if x.ndim == 0:
        x = jnp.reshape(x, (1,))
        squeeze = True

    n_rows = x.shape[0]
    row_elems = 1
    for s in x.shape[1:]:
        row_elems *= s
    itemsize = jnp.dtype(x.dtype).itemsize
    row_bytes = max(1, row_elems * itemsize)

    # ~target_chunk_bytes per descriptor, but never more than _MAX_CHUNKS
    # descriptors and never more rows than exist.
    rows_per_chunk = max(1, target_chunk_bytes // row_bytes)
    rows_per_chunk = max(rows_per_chunk, -(-n_rows // _MAX_CHUNKS))
    rows_per_chunk = min(rows_per_chunk, n_rows)

    y = pl.pallas_call(
        _make_hbm_copy_kernel(n_rows, rows_per_chunk),
        out_shape=jax.ShapeDtypeStruct(x.shape, x.dtype),
        in_specs=[pl.BlockSpec(memory_space=pl.ANY)],
        out_specs=pl.BlockSpec(memory_space=pl.ANY),
        scratch_shapes=[pltpu.SemaphoreType.DMA((_MAX_INFLIGHT,))],
        cost_estimate=pl.CostEstimate(
            flops=0,
            transcendentals=0,
            bytes_accessed=2 * n_rows * row_elems * itemsize,
        ),
    )(x)

    return jnp.reshape(y, ()) if squeeze else y


class ViewPallas:
    """JAX/Pallas equivalent of the PyTorch View(nn.Module)."""

    def __init__(self, *args):
        self.shape = tuple(int(s) for s in args)

    def __call__(self, x):
        trailing = 1
        for s in self.shape:
            trailing *= s
        total = x.size
        assert total % trailing == 0, "View: incompatible shape"
        batch = total // trailing

        # Hot path: the physical data movement of .view(), as HBM->HBM DMA.
        # (A pure jnp.reshape with no kernel would be the true optimum; the
        # kernel is kept because the exercise requires one for the forward.)
        y = _pallas_copy(x)
        # Glue: metadata-only reshape to (-1, *self.shape).
        return jnp.reshape(y, (batch,) + self.shape)


if __name__ == "__main__":
    key = jax.random.PRNGKey(0)
    k1, k2, k3 = jax.random.split(key, 3)

    # Case 1: NCHW feature map flattened before an nn.Linear: (2,4,16,16) -> (2,1024)
    x = jax.random.normal(k1, (2, 4, 16, 16), dtype=jnp.float32)
    view = ViewPallas(4 * 16 * 16)
    y = jax.block_until_ready(view(x))
    ref = jnp.reshape(x, (-1, 4 * 16 * 16))
    assert y.shape == (2, 1024), y.shape
    assert y.dtype == x.dtype
    assert bool(jnp.array_equal(y, ref))

    # Case 2: multi-dim target with a total (210) not divisible by 128 —
    # previously hit the pad+slice path, now needs no padding at all.
    x2 = jax.random.normal(k2, (2, 3, 5, 7), dtype=jnp.float32)
    view2 = ViewPallas(3, 5, 7)
    y2 = jax.block_until_ready(view2(x2))
    ref2 = jnp.reshape(x2, (-1, 3, 5, 7))
    assert y2.shape == (2, 3, 5, 7), y2.shape
    assert bool(jnp.array_equal(y2, ref2))

    # Case 3: force many small chunks (7 descriptors > 4-deep in-flight window,
    # ragged last chunk) to exercise the rolling-semaphore DMA logic on-device.
    x3 = jax.random.normal(k3, (50, 128), dtype=jnp.float32)
    y3 = jax.block_until_ready(_pallas_copy(x3, target_chunk_bytes=4096))
    assert bool(jnp.array_equal(y3, x3))

    print("KERNEL_OK")
</pallas_src>

<mosaic_0001>
module attributes {stable_mosaic.version = 11 : i64} {
  func.func @kernel(%arg0: memref<2x4x16x16xf32, #tpu.memory_space<any>>, %arg1: memref<2x4x16x16xf32, #tpu.memory_space<any>>, %arg2: memref<4x!tpu.dma_semaphore, #tpu.memory_space<semaphore_mem>>) attributes {dimension_semantics = [], scalar_prefetch = 0 : i64, scratch_operands = 1 : i64, tpu.core_type = #tpu.core_type<tc>} {
    %c0_i32 = arith.constant 0 : i32
    %c0_i32_0 = arith.constant 0 : i32
    %c0_i32_1 = arith.constant 0 : i32
    %c0_i32_2 = arith.constant 0 : i32
    %c0_i32_3 = arith.constant 0 : i32
    %0 = tpu.memref_slice %arg0[%c0_i32_0, %c0_i32_1, %c0_i32_2, %c0_i32_3] : memref<2x4x16x16xf32, #tpu.memory_space<any>> -> memref<2x4x16x16xf32, #tpu.memory_space<any>>
    %c0_i32_4 = arith.constant 0 : i32
    %c0_i32_5 = arith.constant 0 : i32
    %c0_i32_6 = arith.constant 0 : i32
    %c0_i32_7 = arith.constant 0 : i32
    %1 = tpu.memref_slice %arg1[%c0_i32_4, %c0_i32_5, %c0_i32_6, %c0_i32_7] : memref<2x4x16x16xf32, #tpu.memory_space<any>> -> memref<2x4x16x16xf32, #tpu.memory_space<any>>
    %2 = tpu.memref_slice %arg2[%c0_i32] : memref<4x!tpu.dma_semaphore, #tpu.memory_space<semaphore_mem>> -> memref<1x!tpu.dma_semaphore, #tpu.memory_space<semaphore_mem>>
    %3 = tpu.memref_squeeze %2 : memref<1x!tpu.dma_semaphore, #tpu.memory_space<semaphore_mem>> -> memref<!tpu.dma_semaphore, #tpu.memory_space<semaphore_mem>>
    tpu.enqueue_dma source(%0 : memref<2x4x16x16xf32, #tpu.memory_space<any>>) target(%1 : memref<2x4x16x16xf32, #tpu.memory_space<any>>) target_semaphore(%3 : memref<!tpu.dma_semaphore, #tpu.memory_space<semaphore_mem>>)
    %c0_i32_8 = arith.constant 0 : i32
    %c0_i32_9 = arith.constant 0 : i32
    %c0_i32_10 = arith.constant 0 : i32
    %c0_i32_11 = arith.constant 0 : i32
    %c0_i32_12 = arith.constant 0 : i32
    %4 = tpu.memref_slice %arg0[%c0_i32_9, %c0_i32_10, %c0_i32_11, %c0_i32_12] : memref<2x4x16x16xf32, #tpu.memory_space<any>> -> memref<2x4x16x16xf32, #tpu.memory_space<any>>
    %c0_i32_13 = arith.constant 0 : i32
    %c0_i32_14 = arith.constant 0 : i32
    %c0_i32_15 = arith.constant 0 : i32
    %c0_i32_16 = arith.constant 0 : i32
    %5 = tpu.memref_slice %arg1[%c0_i32_13, %c0_i32_14, %c0_i32_15, %c0_i32_16] : memref<2x4x16x16xf32, #tpu.memory_space<any>> -> memref<2x4x16x16xf32, #tpu.memory_space<any>>
    %6 = tpu.memref_slice %arg2[%c0_i32_8] : memref<4x!tpu.dma_semaphore, #tpu.memory_space<semaphore_mem>> -> memref<1x!tpu.dma_semaphore, #tpu.memory_space<semaphore_mem>>
    %7 = tpu.memref_squeeze %6 : memref<1x!tpu.dma_semaphore, #tpu.memory_space<semaphore_mem>> -> memref<!tpu.dma_semaphore, #tpu.memory_space<semaphore_mem>>
    tpu.wait_dma2 semaphore(%7 : memref<!tpu.dma_semaphore, #tpu.memory_space<semaphore_mem>>) src(%4 : memref<2x4x16x16xf32, #tpu.memory_space<any>>) dst(%5 : memref<2x4x16x16xf32, #tpu.memory_space<any>>)
    return
  }
}

</mosaic_0001>

<bundles_post_ra>
// kernel: tpu_custom_call.1
= control target key start
LH: loop header
LB: loop body
LE: loop exit
PB: predicated region body
PF: predicated region fallthrough
CT: control target
= control target key end

     0   :  { %s60_s6 = smov [#allocation2]   ;;  %s61_s7 = smov [#allocation3]   ;;  %s79_s0 = inlined_call_operand.hbm [shape: f32[2,4,16,16], index: 0, kind: input, shape index: {}]   ;;  %s80_s1 = inlined_call_operand.hbm [shape: f32[2,4,16,16], index: 1, kind: output, shape index: {}]  }
   0x1   :  { %s62_s8 = smov 0  }
   0x2   :  { %18 = dma.general %s79_s0, 2048, %s80_s1, %s60_s6, %s61_s7, [#allocation4], %s62_s8, 0  }
   0x3   :  { %58 = dma.done.wait [#allocation2], 2048 }
   0x4   :  { %59 = vsyncadd [#allocation2], 4294965248 }
   0x5   :  { %24 = vsyncmov [#allocation2] }
   0x8   :  { %s25_s13 = vpop.sfrf %24 }
   0x9   :  { %p51_p0 = scmp.ne.s32.totalorder %s25_s13, 0 }
   0xb   :  { %29 = shalt.err (%p51_p0)  }
   0xc   :  { %31 = vsyncmov [#allocation2 + $0x1] }
   0xf   :  { %s32_s14 = vpop.sfrf %31 }
  0x10   :  { %p52_p1 = scmp.ne.s32.totalorder %s32_s14, 0 }
  0x12   :  { %36 = shalt.err (%p52_p1)  }
  0x13   :  { %38 = vsyncmov [#allocation2 + $0x2] }
  0x16   :  { %s39_s15 = vpop.sfrf %38 }
  0x17   :  { %p53_p2 = scmp.ne.s32.totalorder %s39_s15, 0 }
  0x19   :  { %43 = shalt.err (%p53_p2)  }
  0x1a   :  { %45 = vsyncmov [#allocation2 + $0x3] }
  0x1d   :  { %s46_s16 = vpop.sfrf %45 }
  0x1e   :  { %p54_p3 = scmp.ne.s32.totalorder %s46_s16, 0 }
  0x20   :  { %50 = shalt.err (%p54_p3)  }

</bundles_post_ra>
